<compile_context>
chip_gen: v5e
topology: v5e:2x2
jax: 0.10.0
libtpu: 0.0.40
codegen_flags: <defaults>
</compile_context>

<pallas_src>
import jax
import jax.numpy as jnp
from jax.experimental import pallas as pl
from jax.experimental.pallas import tpu as pltpu


OUT_LANES_WIDE = 128   # lane-dense output slab (small-N latency path, unmasked vst)
OUT_LANES_NARROW = 8   # narrow output (large-N throughput path, tiny HBM writeback)
SMALL_N_MAX = 128      # single grid step at/below this residue count
LARGE_TILE_N = 1024    # max row tile for the large-N path


def _round_up(x, m):
    return ((x + m - 1) // m) * m


def _sublane(dtype):
    # bf16 rows pack two-per-sublane -> (16,128) min tile; round row tiles to 16.
    return 16 if jnp.dtype(dtype) == jnp.dtype(jnp.bfloat16) else 8


# -----------------------------------------------------------------------------
# Pallas kernel: fused residue-level score MLP
# -----------------------------------------------------------------------------
def _score_kernel(
    x_ref,        # (TN, F)          node-feature tile (f32, un-padded lanes)
    w_emb_ref,    # (F, H)           embedding weight (compute dtype)
    b_emb_ref,    # (1, H)           embedding bias with t_emb folded in (f32)
    w1a_ref,      # (H, H)
    b1a_ref,      # (1, H)
    w1b_ref,      # (H, H)
    b1b_ref,      # (1, H)
    w2a_ref,      # (H, H)
    b2a_ref,      # (1, H)
    w2b_ref,      # (H, H)
    b2b_ref,      # (1, H)
    w_out_ref,    # (H, OUT_LANES)   score head (zero-padded lanes beyond 3)
    b_out_ref,    # (1, OUT_LANES)
    o_ref,        # (TN, OUT_LANES)  output tile (f32; score lives in lanes 0..2)
):
    wdt = w_emb_ref.dtype  # MXU operand dtype (f32 or bf16); accumulation is f32

    # Node embedding + time conditioning (t_emb already folded into b_emb).
    h = jnp.dot(x_ref[...].astype(wdt), w_emb_ref[...],
                preferred_element_type=jnp.float32)
    h = jnp.maximum(h + b_emb_ref[...], 0.0)

    # Residual MLP block 1 (f32 elementwise, operands cast for the MXU).
    u = jnp.dot(h.astype(wdt), w1a_ref[...], preferred_element_type=jnp.float32)
    u = jnp.maximum(u + b1a_ref[...], 0.0)
    u = jnp.dot(u.astype(wdt), w1b_ref[...], preferred_element_type=jnp.float32)
    h = h + u + b1b_ref[...]

    # Residual MLP block 2.
    u = jnp.dot(h.astype(wdt), w2a_ref[...], preferred_element_type=jnp.float32)
    u = jnp.maximum(u + b2a_ref[...], 0.0)
    u = jnp.dot(u.astype(wdt), w2b_ref[...], preferred_element_type=jnp.float32)
    h = h + u + b2b_ref[...]

    # Score head.
    o_ref[...] = (
        jnp.dot(h.astype(wdt), w_out_ref[...], preferred_element_type=jnp.float32)
        + b_out_ref[...]
    ).astype(o_ref.dtype)


# -----------------------------------------------------------------------------
# One-time parameter preparation (hoisted out of the per-call forward)
# -----------------------------------------------------------------------------
def prepare_params(params, *, compute_dtype=jnp.bfloat16):
    """Pad/cast weights once; returns a pytree passed to every forward call."""
    f32 = jnp.float32
    wdt = compute_dtype
    H = params["w_emb"].shape[1]

    def pad_head(w, b, lanes):
        wp = jnp.zeros((H, lanes), f32).at[:, :3].set(w).astype(wdt)
        bp = jnp.zeros((1, lanes), f32).at[:, :3].set(b)
        return wp, bp

    w_out_w, b_out_w = pad_head(params["w_out"], params["b_out"], OUT_LANES_WIDE)
    w_out_n, b_out_n = pad_head(params["w_out"], params["b_out"], OUT_LANES_NARROW)

    prep = {
        "w_emb": params["w_emb"].astype(wdt),
        "b_emb": params["b_emb"].astype(f32),
        "w1a": params["w1a"].astype(wdt), "b1a": params["b1a"].astype(f32),
        "w1b": params["w1b"].astype(wdt), "b1b": params["b1b"].astype(f32),
        "w2a": params["w2a"].astype(wdt), "b2a": params["b2a"].astype(f32),
        "w2b": params["w2b"].astype(wdt), "b2b": params["b2b"].astype(f32),
        "w_out_wide": w_out_w, "b_out_wide": b_out_w,
        "w_out_narrow": w_out_n, "b_out_narrow": b_out_n,
    }
    return jax.tree_util.tree_map(jnp.asarray, prep)


# -----------------------------------------------------------------------------
# Forward wrapper
# -----------------------------------------------------------------------------
def _full_spec(shape):
    # Whole-array block with a CONSTANT index map: the block index never changes
    # across the grid, so the weight is DMA'd once and stays VMEM-resident.
    # (If H is ever scaled up, add pipeline_mode=pl.Buffered(1) here.)
    return pl.BlockSpec(shape, lambda i: tuple(0 for _ in shape))


def _choose_tiling(N, sub):
    if N <= SMALL_N_MAX:
        # Latency path: single grid step, lane-dense (128-wide) output slab.
        tile_n = _round_up(max(N, 1), sub)
        out_lanes = OUT_LANES_WIDE
    else:
        # Throughput path: >=2 row tiles (lets the "parallel" grid axis shard
        # across v7x's two TensorCores), narrow output to cut HBM writeback.
        tile_n = min(LARGE_TILE_N, _round_up(-(-N // 2), sub))
        out_lanes = OUT_LANES_NARROW
    Np = _round_up(N, tile_n)
    return tile_n, Np, out_lanes


@jax.jit
def ddpm_score_model(x, t_emb, prep):
    """x: (N, F) f32 node features; t_emb: (1, H); prep: prepare_params() output.

    Returns (N, 3) f32 score.
    """
    N, F = x.shape
    wdt = prep["w_emb"].dtype
    sub = _sublane(wdt)
    tile_n, Np, out_lanes = _choose_tiling(N, sub)

    if out_lanes == OUT_LANES_WIDE:
        w_out, b_out = prep["w_out_wide"], prep["b_out_wide"]
    else:
        w_out, b_out = prep["w_out_narrow"], prep["b_out_narrow"]

    # Ragged N: row-pad only when needed (static check -> no HLOs when aligned).
    x_p = x if Np == N else jnp.zeros((Np, F), x.dtype).at[:N, :].set(x)

    # Only per-call weight work: fold the broadcast time embedding into the bias.
    b_emb_eff = (prep["b_emb"] + t_emb).astype(jnp.float32)

    weight_args = (
        prep["w_emb"], b_emb_eff,
        prep["w1a"], prep["b1a"], prep["w1b"], prep["b1b"],
        prep["w2a"], prep["b2a"], prep["w2b"], prep["b2b"],
        w_out, b_out,
    )

    in_specs = [pl.BlockSpec((tile_n, F), lambda i: (i, 0))] + [
        _full_spec(w.shape) for w in weight_args
    ]
    out_spec = pl.BlockSpec((tile_n, out_lanes), lambda i: (i, 0))

    out = pl.pallas_call(
        _score_kernel,
        out_shape=jax.ShapeDtypeStruct((Np, out_lanes), jnp.float32),
        grid_spec=pl.GridSpec(
            grid=(Np // tile_n,),
            in_specs=in_specs,
            out_specs=out_spec,
        ),
        compiler_params=pltpu.CompilerParams(
            dimension_semantics=("parallel",),
        ),
    )(x_p, *weight_args)

    return out[:N, :3]


# -----------------------------------------------------------------------------
# Parameter init (deterministic) + time embedding glue
# -----------------------------------------------------------------------------
def init_params(key, f_in, hidden):
    ks = jax.random.split(key, 8)

    def lin(k, fan_in, fan_out):
        scale = 1.0 / jnp.sqrt(jnp.float32(fan_in))
        return jax.random.uniform(k, (fan_in, fan_out), jnp.float32, -scale, scale)

    return {
        "w_emb": lin(ks[0], f_in, hidden),
        "b_emb": jnp.zeros((1, hidden), jnp.float32),
        "w1a": lin(ks[1], hidden, hidden),
        "b1a": jnp.zeros((1, hidden), jnp.float32),
        "w1b": lin(ks[2], hidden, hidden),
        "b1b": jnp.zeros((1, hidden), jnp.float32),
        "w2a": lin(ks[3], hidden, hidden),
        "b2a": jnp.zeros((1, hidden), jnp.float32),
        "w2b": lin(ks[4], hidden, hidden),
        "b2b": jnp.zeros((1, hidden), jnp.float32),
        "w_out": lin(ks[5], hidden, 3),
        "b_out": jnp.zeros((1, 3), jnp.float32),
    }


def sinusoidal_time_embedding(t, hidden):
    """t: scalar diffusion time in [0,1] -> (1, hidden) embedding (glue, plain JAX)."""
    assert hidden % 2 == 0, "hidden width must be even for sin/cos time embedding"
    half = hidden // 2
    freqs = jnp.exp(
        -jnp.log(10000.0) * jnp.arange(half, dtype=jnp.float32) / float(half)
    )
    ang = t * freqs
    return jnp.concatenate([jnp.sin(ang), jnp.cos(ang)])[None, :]


# -----------------------------------------------------------------------------
# Pure-JAX reference for correctness
# -----------------------------------------------------------------------------
def ref_forward(x, t_emb, p):
    h = jnp.maximum(x @ p["w_emb"] + p["b_emb"] + t_emb, 0.0)
    u = jnp.maximum(h @ p["w1a"] + p["b1a"], 0.0) @ p["w1b"] + p["b1b"]
    h = h + u
    u = jnp.maximum(h @ p["w2a"] + p["b2a"], 0.0) @ p["w2b"] + p["b2b"]
    h = h + u
    return h @ p["w_out"] + p["b_out"]


if __name__ == "__main__":
    N, F_IN, HIDDEN = 64, 16, 128  # residues, node-feature dim, hidden width

    key = jax.random.PRNGKey(0)
    k_x, k_p, k_x2, k_x3 = jax.random.split(key, 4)

    x = jax.random.normal(k_x, (N, F_IN), jnp.float32)   # residue-level features
    t = jnp.float32(0.37)                                # diffusion time
    t_emb = sinusoidal_time_embedding(t, HIDDEN)
    params = init_params(k_p, F_IN, HIDDEN)

    expected = ref_forward(x, t_emb, params)

    # One-time prepared weights (padding / casts hoisted out of the forward).
    prep_f32 = prepare_params(params, compute_dtype=jnp.float32)
    prep_bf16 = prepare_params(params, compute_dtype=jnp.bfloat16)

    # f32 operands: tight tolerance vs. reference.
    score = jax.block_until_ready(ddpm_score_model(x, t_emb, prep_f32))
    assert score.shape == (N, 3)
    assert jnp.allclose(score, expected, atol=1e-4, rtol=1e-4)

    # bf16 MXU operands (f32 accumulation, default on v6e/v7x): looser tolerance.
    score_bf16 = jax.block_until_ready(ddpm_score_model(x, t_emb, prep_bf16))
    assert score_bf16.shape == (N, 3)
    assert jnp.allclose(score_bf16, expected, atol=5e-2, rtol=5e-2)

    # Ragged residue count (row padding, small-N single-step path).
    N2 = 37
    x2 = jax.random.normal(k_x2, (N2, F_IN), jnp.float32)
    score2 = jax.block_until_ready(ddpm_score_model(x2, t_emb, prep_f32))
    assert score2.shape == (N2, 3)
    assert jnp.allclose(score2, ref_forward(x2, t_emb, params), atol=1e-4, rtol=1e-4)

    # Large-N throughput path (>=2 grid tiles for v7x TC sharding, narrow output).
    N3 = 300
    x3 = jax.random.normal(k_x3, (N3, F_IN), jnp.float32)
    score3 = jax.block_until_ready(ddpm_score_model(x3, t_emb, prep_bf16))
    assert score3.shape == (N3, 3)
    assert jnp.allclose(score3, ref_forward(x3, t_emb, params), atol=5e-2, rtol=5e-2)

    print("KERNEL_OK")
</pallas_src>

<mosaic_0001>
module attributes {stable_mosaic.version = 11 : i64} {
  func.func @_score_kernel(%arg0: i32, %arg1: memref<64x16xf32, #tpu.memory_space<vmem>>, %arg2: memref<16x128xf32, #tpu.memory_space<vmem>>, %arg3: memref<1x128xf32, #tpu.memory_space<vmem>>, %arg4: memref<128x128xf32, #tpu.memory_space<vmem>>, %arg5: memref<1x128xf32, #tpu.memory_space<vmem>>, %arg6: memref<128x128xf32, #tpu.memory_space<vmem>>, %arg7: memref<1x128xf32, #tpu.memory_space<vmem>>, %arg8: memref<128x128xf32, #tpu.memory_space<vmem>>, %arg9: memref<1x128xf32, #tpu.memory_space<vmem>>, %arg10: memref<128x128xf32, #tpu.memory_space<vmem>>, %arg11: memref<1x128xf32, #tpu.memory_space<vmem>>, %arg12: memref<128x128xf32, #tpu.memory_space<vmem>>, %arg13: memref<1x128xf32, #tpu.memory_space<vmem>>, %arg14: memref<64x128xf32, #tpu.memory_space<vmem>>) attributes {dimension_semantics = [#tpu.dimension_semantics<parallel>], iteration_bounds = array<i64: 1>, scalar_prefetch = 0 : i64, scratch_operands = 0 : i64, tpu.core_type = #tpu.core_type<tc>, window_params = [{transform_indices = @transform_0, window_bounds = array<i64: 64, 16>}, {pipeline_mode = #tpu.pipeline_mode<synchronous>, transform_indices = @transform_1, window_bounds = array<i64: 16, 128>}, {pipeline_mode = #tpu.pipeline_mode<synchronous>, transform_indices = @transform_2, window_bounds = array<i64: 1, 128>}, {pipeline_mode = #tpu.pipeline_mode<synchronous>, transform_indices = @transform_3, window_bounds = array<i64: 128, 128>}, {pipeline_mode = #tpu.pipeline_mode<synchronous>, transform_indices = @transform_4, window_bounds = array<i64: 1, 128>}, {pipeline_mode = #tpu.pipeline_mode<synchronous>, transform_indices = @transform_5, window_bounds = array<i64: 128, 128>}, {pipeline_mode = #tpu.pipeline_mode<synchronous>, transform_indices = @transform_6, window_bounds = array<i64: 1, 128>}, {pipeline_mode = #tpu.pipeline_mode<synchronous>, transform_indices = @transform_7, window_bounds = array<i64: 128, 128>}, {pipeline_mode = #tpu.pipeline_mode<synchronous>, transform_indices = @transform_8, window_bounds = array<i64: 1, 128>}, {pipeline_mode = #tpu.pipeline_mode<synchronous>, transform_indices = @transform_9, window_bounds = array<i64: 128, 128>}, {pipeline_mode = #tpu.pipeline_mode<synchronous>, transform_indices = @transform_10, window_bounds = array<i64: 1, 128>}, {pipeline_mode = #tpu.pipeline_mode<synchronous>, transform_indices = @transform_11, window_bounds = array<i64: 128, 128>}, {pipeline_mode = #tpu.pipeline_mode<synchronous>, transform_indices = @transform_12, window_bounds = array<i64: 1, 128>}, {transform_indices = @transform_13, window_bounds = array<i64: 64, 128>}]} {
    %c0 = arith.constant 0 : index
    %c0_0 = arith.constant 0 : index
    %0 = vector.load %arg1[%c0, %c0_0] : memref<64x16xf32, #tpu.memory_space<vmem>>, vector<64x16xf32>
    %c0_1 = arith.constant 0 : index
    %c0_2 = arith.constant 0 : index
    %1 = vector.load %arg2[%c0_1, %c0_2] : memref<16x128xf32, #tpu.memory_space<vmem>>, vector<16x128xf32>
    %cst = arith.constant dense<0.000000e+00> : vector<64x128xf32>
    %2 = tpu.matmul %0, %1, %cst {dimension_numbers = #tpu.dot_dimension_numbers<[1], [0], [0], [1], [0, 0, 1, 1], [], []>} : vector<64x16xf32>, vector<16x128xf32>, vector<64x128xf32> -> vector<64x128xf32>
    %c0_3 = arith.constant 0 : index
    %c0_4 = arith.constant 0 : index
    %3 = vector.load %arg3[%c0_3, %c0_4] : memref<1x128xf32, #tpu.memory_space<vmem>>, vector<1x128xf32>
    %4 = vector.broadcast %3 : vector<1x128xf32> to vector<64x128xf32>
    %5 = arith.addf %2, %4 : vector<64x128xf32>
    %cst_5 = arith.constant 0.000000e+00 : f32
    %6 = vector.broadcast %cst_5 : f32 to vector<64x128xf32>
    %7 = arith.maximumf %5, %6 : vector<64x128xf32>
    %c0_6 = arith.constant 0 : index
    %c0_7 = arith.constant 0 : index
    %8 = vector.load %arg4[%c0_6, %c0_7] : memref<128x128xf32, #tpu.memory_space<vmem>>, vector<128x128xf32>
    %cst_8 = arith.constant dense<0.000000e+00> : vector<64x128xf32>
    %9 = tpu.matmul %7, %8, %cst_8 {dimension_numbers = #tpu.dot_dimension_numbers<[1], [0], [0], [1], [0, 0, 1, 1], [], []>} : vector<64x128xf32>, vector<128x128xf32>, vector<64x128xf32> -> vector<64x128xf32>
    %c0_9 = arith.constant 0 : index
    %c0_10 = arith.constant 0 : index
    %10 = vector.load %arg5[%c0_9, %c0_10] : memref<1x128xf32, #tpu.memory_space<vmem>>, vector<1x128xf32>
    %11 = vector.broadcast %10 : vector<1x128xf32> to vector<64x128xf32>
    %12 = arith.addf %9, %11 : vector<64x128xf32>
    %cst_11 = arith.constant 0.000000e+00 : f32
    %13 = vector.broadcast %cst_11 : f32 to vector<64x128xf32>
    %14 = arith.maximumf %12, %13 : vector<64x128xf32>
    %c0_12 = arith.constant 0 : index
    %c0_13 = arith.constant 0 : index
    %15 = vector.load %arg6[%c0_12, %c0_13] : memref<128x128xf32, #tpu.memory_space<vmem>>, vector<128x128xf32>
    %cst_14 = arith.constant dense<0.000000e+00> : vector<64x128xf32>
    %16 = tpu.matmul %14, %15, %cst_14 {dimension_numbers = #tpu.dot_dimension_numbers<[1], [0], [0], [1], [0, 0, 1, 1], [], []>} : vector<64x128xf32>, vector<128x128xf32>, vector<64x128xf32> -> vector<64x128xf32>
    %17 = arith.addf %7, %16 : vector<64x128xf32>
    %c0_15 = arith.constant 0 : index
    %c0_16 = arith.constant 0 : index
    %18 = vector.load %arg7[%c0_15, %c0_16] : memref<1x128xf32, #tpu.memory_space<vmem>>, vector<1x128xf32>
    %19 = vector.broadcast %18 : vector<1x128xf32> to vector<64x128xf32>
    %20 = arith.addf %17, %19 : vector<64x128xf32>
    %c0_17 = arith.constant 0 : index
    %c0_18 = arith.constant 0 : index
    %21 = vector.load %arg8[%c0_17, %c0_18] : memref<128x128xf32, #tpu.memory_space<vmem>>, vector<128x128xf32>
    %cst_19 = arith.constant dense<0.000000e+00> : vector<64x128xf32>
    %22 = tpu.matmul %20, %21, %cst_19 {dimension_numbers = #tpu.dot_dimension_numbers<[1], [0], [0], [1], [0, 0, 1, 1], [], []>} : vector<64x128xf32>, vector<128x128xf32>, vector<64x128xf32> -> vector<64x128xf32>
    %c0_20 = arith.constant 0 : index
    %c0_21 = arith.constant 0 : index
    %23 = vector.load %arg9[%c0_20, %c0_21] : memref<1x128xf32, #tpu.memory_space<vmem>>, vector<1x128xf32>
    %24 = vector.broadcast %23 : vector<1x128xf32> to vector<64x128xf32>
    %25 = arith.addf %22, %24 : vector<64x128xf32>
    %cst_22 = arith.constant 0.000000e+00 : f32
    %26 = vector.broadcast %cst_22 : f32 to vector<64x128xf32>
    %27 = arith.maximumf %25, %26 : vector<64x128xf32>
    %c0_23 = arith.constant 0 : index
    %c0_24 = arith.constant 0 : index
    %28 = vector.load %arg10[%c0_23, %c0_24] : memref<128x128xf32, #tpu.memory_space<vmem>>, vector<128x128xf32>
    %cst_25 = arith.constant dense<0.000000e+00> : vector<64x128xf32>
    %29 = tpu.matmul %27, %28, %cst_25 {dimension_numbers = #tpu.dot_dimension_numbers<[1], [0], [0], [1], [0, 0, 1, 1], [], []>} : vector<64x128xf32>, vector<128x128xf32>, vector<64x128xf32> -> vector<64x128xf32>
    %30 = arith.addf %20, %29 : vector<64x128xf32>
    %c0_26 = arith.constant 0 : index
    %c0_27 = arith.constant 0 : index
    %31 = vector.load %arg11[%c0_26, %c0_27] : memref<1x128xf32, #tpu.memory_space<vmem>>, vector<1x128xf32>
    %32 = vector.broadcast %31 : vector<1x128xf32> to vector<64x128xf32>
    %33 = arith.addf %30, %32 : vector<64x128xf32>
    %c0_28 = arith.constant 0 : index
    %c0_29 = arith.constant 0 : index
    %34 = vector.load %arg12[%c0_28, %c0_29] : memref<128x128xf32, #tpu.memory_space<vmem>>, vector<128x128xf32>
    %cst_30 = arith.constant dense<0.000000e+00> : vector<64x128xf32>
    %35 = tpu.matmul %33, %34, %cst_30 {dimension_numbers = #tpu.dot_dimension_numbers<[1], [0], [0], [1], [0, 0, 1, 1], [], []>} : vector<64x128xf32>, vector<128x128xf32>, vector<64x128xf32> -> vector<64x128xf32>
    %c0_31 = arith.constant 0 : index
    %c0_32 = arith.constant 0 : index
    %36 = vector.load %arg13[%c0_31, %c0_32] : memref<1x128xf32, #tpu.memory_space<vmem>>, vector<1x128xf32>
    %37 = vector.broadcast %36 : vector<1x128xf32> to vector<64x128xf32>
    %38 = arith.addf %35, %37 : vector<64x128xf32>
    %c0_33 = arith.constant 0 : index
    %c0_34 = arith.constant 0 : index
    %39 = vector.load %arg14[%c0_33, %c0_34] : memref<64x128xf32, #tpu.memory_space<vmem>>, vector<64x128xf32>
    tpu.vector_store %arg14[%c0_33, %c0_34], %38 {strides = array<i32>} : memref<64x128xf32, #tpu.memory_space<vmem>>, vector<64x128xf32>,
    return
  }
  func.func @transform_0(%arg0: i32) -> (i32, i32) {
    %c0_i32 = arith.constant 0 : i32
    %c0_i32_0 = arith.constant 0 : i32
    return %arg0, %c0_i32 : i32, i32
  }
  func.func @transform_1(%arg0: i32) -> (i32, i32) {
    %c0_i32 = arith.constant 0 : i32
    %c0_i32_0 = arith.constant 0 : i32
    %c0_i32_1 = arith.constant 0 : i32
    return %c0_i32, %c0_i32_0 : i32, i32
  }
  func.func @transform_2(%arg0: i32) -> (i32, i32) {
    %c0_i32 = arith.constant 0 : i32
    %c0_i32_0 = arith.constant 0 : i32
    %c0_i32_1 = arith.constant 0 : i32
    return %c0_i32, %c0_i32_0 : i32, i32
  }
  func.func @transform_3(%arg0: i32) -> (i32, i32) {
    %c0_i32 = arith.constant 0 : i32
    %c0_i32_0 = arith.constant 0 : i32
    %c0_i32_1 = arith.constant 0 : i32
    return %c0_i32, %c0_i32_0 : i32, i32
  }
  func.func @transform_4(%arg0: i32) -> (i32, i32) {
    %c0_i32 = arith.constant 0 : i32
    %c0_i32_0 = arith.constant 0 : i32
    %c0_i32_1 = arith.constant 0 : i32
    return %c0_i32, %c0_i32_0 : i32, i32
  }
  func.func @transform_5(%arg0: i32) -> (i32, i32) {
    %c0_i32 = arith.constant 0 : i32
    %c0_i32_0 = arith.constant 0 : i32
    %c0_i32_1 = arith.constant 0 : i32
    return %c0_i32, %c0_i32_0 : i32, i32
  }
  func.func @transform_6(%arg0: i32) -> (i32, i32) {
    %c0_i32 = arith.constant 0 : i32
    %c0_i32_0 = arith.constant 0 : i32
    %c0_i32_1 = arith.constant 0 : i32
    return %c0_i32, %c0_i32_0 : i32, i32
  }
  func.func @transform_7(%arg0: i32) -> (i32, i32) {
    %c0_i32 = arith.constant 0 : i32
    %c0_i32_0 = arith.constant 0 : i32
    %c0_i32_1 = arith.constant 0 : i32
    return %c0_i32, %c0_i32_0 : i32, i32
  }
  func.func @transform_8(%arg0: i32) -> (i32, i32) {
    %c0_i32 = arith.constant 0 : i32
    %c0_i32_0 = arith.constant 0 : i32
    %c0_i32_1 = arith.constant 0 : i32
    return %c0_i32, %c0_i32_0 : i32, i32
  }
  func.func @transform_9(%arg0: i32) -> (i32, i32) {
    %c0_i32 = arith.constant 0 : i32
    %c0_i32_0 = arith.constant 0 : i32
    %c0_i32_1 = arith.constant 0 : i32
    return %c0_i32, %c0_i32_0 : i32, i32
  }
  func.func @transform_10(%arg0: i32) -> (i32, i32) {
    %c0_i32 = arith.constant 0 : i32
    %c0_i32_0 = arith.constant 0 : i32
    %c0_i32_1 = arith.constant 0 : i32
    return %c0_i32, %c0_i32_0 : i32, i32
  }
  func.func @transform_11(%arg0: i32) -> (i32, i32) {
    %c0_i32 = arith.constant 0 : i32
    %c0_i32_0 = arith.constant 0 : i32
    %c0_i32_1 = arith.constant 0 : i32
    return %c0_i32, %c0_i32_0 : i32, i32
  }
  func.func @transform_12(%arg0: i32) -> (i32, i32) {
    %c0_i32 = arith.constant 0 : i32
    %c0_i32_0 = arith.constant 0 : i32
    %c0_i32_1 = arith.constant 0 : i32
    return %c0_i32, %c0_i32_0 : i32, i32
  }
  func.func @transform_13(%arg0: i32) -> (i32, i32) {
    %c0_i32 = arith.constant 0 : i32
    %c0_i32_0 = arith.constant 0 : i32
    return %arg0, %c0_i32 : i32, i32
  }
}

</mosaic_0001>

<bundles_post_ra>
// kernel: ddpm_score_model.1
= control target key start
LH: loop header
LB: loop body
LE: loop exit
PB: predicated region body
PF: predicated region fallthrough
CT: control target
= control target key end

     0   :  { %18 = vsyncpa [#allocation3], 0  ;;  %s1029_s0 = inlined_call_operand.vmem [shape: f32[64,16], index: 0, kind: input, shape index: {}]   ;;  %s1030_s1 = inlined_call_operand.vmem [shape: f32[16,128], index: 1, kind: input, shape index: {}]   ;;  %s1031_s2 = inlined_call_operand.vmem [shape: f32[1,128], index: 2, kind: input, shape index: {}]   ;;  %s1032_s3 = inlined_call_operand.hbm [shape: f32[128,128], index: 3, kind: input, shape index: {}]   ;;  %s1033_s4 = inlined_call_operand.vmem [shape: f32[1,128], index: 4, kind: input, shape index: {}]   ;;  %s1034_s5 = inlined_call_operand.hbm [shape: f32[128,128], index: 5, kind: input, shape index: {}]   ;;  %s1035_s6 = inlined_call_operand.vmem [shape: f32[1,128], index: 6, kind: input, shape index: {}]   ;;  %s1036_s7 = inlined_call_operand.hbm [shape: f32[128,128], index: 7, kind: input, shape index: {}]   ;;  %s1037_s8 = inlined_call_operand.vmem [shape: f32[1,128], index: 8, kind: input, shape index: {}]   ;;  %s1038_s9 = inlined_call_operand.hbm [shape: f32[128,128], index: 9, kind: input, shape index: {}]   ;;  %s1039_s10 = inlined_call_operand.vmem [shape: f32[1,128], index: 10, kind: input, shape index: {}]   ;;  %s1040_s11 = inlined_call_operand.hbm [shape: f32[128,128], index: 11, kind: input, shape index: {}]   ;;  %s1041_s12 = inlined_call_operand.vmem [shape: f32[1,128], index: 12, kind: input, shape index: {}]   ;;  %s1042_s13 = inlined_call_operand.vmem [shape: f32[64,128], index: 13, kind: output, shape index: {}]  }
   0x1   :  { %19 = vsyncpa [#allocation5], 0 }
   0x2   :  { %20 = vsyncpa [#allocation8], 0  ;;  %s46_s27 = sshll.u32 %s1034_s5, 4  ;;  %s759_s28 = smov [#allocation4]   ;;  %s47_s27 = int_to_ptr.hbm [resolvable:$true] %s46_s27 }
   0x3   :  { %s48_s29 = sshll.u32 %s759_s28, 4  ;;  %s76_s15 = sshll.u32 %s1038_s9, 4  ;;  %s49_s29 = int_to_ptr.vmem [resolvable:$true] %s48_s29  ;;  %s77_s15 = int_to_ptr.hbm [resolvable:$true] %s76_s15 }
   0x4   :  { %s760_s16 = smov 128   ;;  %s761_s17 = smov 8  }
   0x5   :  { %54 = dma.hbm_to_vmem [thread:$0]  %s47_s27, 2048, %s49_s29, [#allocation5], %s760_s16, %s760_s16, %s761_s17  }
   0x6   :  { %s762_s18 = smov [#allocation7]   ;;  %s31_s22 = sshll.u32 %s1032_s3, 4  ;;  %s32_s22 = int_to_ptr.hbm [resolvable:$true] %s31_s22 }
   0x7   :  { %s78_s19 = sshll.u32 %s762_s18, 4  ;;  %s61_s24 = sshll.u32 %s1036_s7, 4  ;;  %s79_s19 = int_to_ptr.vmem [resolvable:$true] %s78_s19  ;;  %s62_s24 = int_to_ptr.hbm [resolvable:$true] %s61_s24 }
   0x8   :  { %84 = dma.hbm_to_vmem [thread:$0]  %s77_s15, 2048, %s79_s19, [#allocation8], %s760_s16, %s760_s16, %s761_s17  }
   0x9   :  { %s763_s25 = smov [#allocation2]   ;;  %s764_s9 = smov [#allocation6]  }
   0xa   :  { %s33_s26 = sshll.u32 %s763_s25, 4  ;;  %s63_s27 = sshll.u32 %s764_s9, 4  ;;  %s34_s26 = int_to_ptr.vmem [resolvable:$true] %s33_s26  ;;  %s64_s27 = int_to_ptr.vmem [resolvable:$true] %s63_s27 }
   0xb   :  { %39 = dma.hbm_to_vmem [thread:$0]  %s32_s22, 2048, %s34_s26, [#allocation3], %s760_s16, %s760_s16, %s761_s17  }
   0xc   :  { %s91_s30 = sshll.u32 %s1040_s11, 4  ;;  %s765_s3 = smov [#allocation9]   ;;  %s92_s30 = int_to_ptr.hbm [resolvable:$true] %s91_s30 }
   0xd   :  { %69 = dma.hbm_to_vmem [thread:$0]  %s62_s24, 2048, %s64_s27, [#allocation5], %s760_s16, %s760_s16, %s761_s17  }
   0xe   :  { %s93_s14 = sshll.u32 %s765_s3, 4  ;;  %s94_s14 = int_to_ptr.vmem [resolvable:$true] %s93_s14 }
   0xf   :  { %99 = dma.hbm_to_vmem [thread:$0]  %s92_s30, 2048, %s94_s14, [#allocation8], %s760_s16, %s760_s16, %s761_s17  }
  0x10   :  { %753 = dma.done.wait [#allocation3], 2048  }
  0x11   :  { %754 = vsyncadd [#allocation3], 4294965248 }
  0x12   :  { %755 = dma.done.wait [#allocation5], 4096  }
  0x13   :  { %756 = vsyncadd [#allocation5], 4294963200 }
  0x14   :  { %757 = dma.done.wait [#allocation8], 4096  }
  0x15   :  { %758 = vsyncadd [#allocation8], 4294963200  ;;  %v131_v0 = vld [vmem:[%s1030_s1 + $0x8] sm:$0xff]  ;;  %v130_v1 = vld [vmem:[%s1030_s1] sm:$0xff]  ;;  %vm136_vm0 = vcmask 130048  }
  0x16   :  { %175 = vmatpush.msra.mxu0 %v131_v0  ;;  %v122_v2 = vld [vmem:[%s1029_s0] sm:$0xff]  ;;  %586 = vmatpush.msra.mxu3 %v131_v0  ;;  %v225_v4 = vld [vmem:[#allocation2 + $0x78] sm:$0xff]  ;;  %v224_v5 = vld [vmem:[#allocation2 + $0x70] sm:$0xff] }
  0x17   :  { %v126_v3 = vld [vmem:[%s1029_s0 + $0x20] sm:$0xff]  ;;  %230 = vmatpush.msra.mxu1 %v225_v4  ;;  %588 = vmatpush.msra.mxu2 %v225_v4  ;;  %v223_v6 = vld [vmem:[#allocation2 + $0x68] sm:$0xff]  ;;  %v221_v10 = vld [vmem:[#allocation2 + $0x58] sm:$0xff] }
  0x18   :  { %176 = vmatpush.msra.mxu0 %v130_v1  ;;  %587 = vmatpush.msra.mxu3 %v130_v1  ;;  %v123_v7 = vld [vmem:[%s1029_s0 + $0x8] sm:$0xff]  ;;  %v222_v9 = vld [vmem:[#allocation2 + $0x60] sm:$0xff]  ;;  %v220_v11 = vld [vmem:[#allocation2 + $0x50] sm:$0xff] }
  0x19   :  { %578 = vmatmul.msk.f32.vlgmr.msra.gmra.mxu0 %vm136_vm0, %v122_v2  ;;  %582 = vmatmul.msk.f32.vlgmr.msra.gmra.mxu3 %vm136_vm0, %v126_v3  ;;  %v127_v8 = vld [vmem:[%s1029_s0 + $0x28] sm:$0xff]  ;;  %v218_v13 = vld [vmem:[#allocation2 + $0x40] sm:$0xff]  ;;  %v124_v14 = vld [vmem:[%s1029_s0 + $0x10] sm:$0xff] }
  0x1a   :  { %231 = vmatpush.msra.mxu1 %v224_v5  ;;  %589 = vmatpush.msra.mxu2 %v224_v5  ;;  %v219_v12 = vld [vmem:[#allocation2 + $0x48] sm:$0xff]  ;;  %v128_v15 = vld [vmem:[%s1029_s0 + $0x30] sm:$0xff]  ;;  %v217_v16 = vld [vmem:[#allocation2 + $0x38] sm:$0xff] }
  0x1b   :  { %v216_v17 = vld [vmem:[#allocation2 + $0x30] sm:$0xff]  ;;  %v215_v18 = vld [vmem:[#allocation2 + $0x28] sm:$0xff]  ;;  %v214_v19 = vld [vmem:[#allocation2 + $0x20] sm:$0xff] }
  0x1c   :  { %232 = vmatpush.msra.mxu1 %v223_v6  ;;  %590 = vmatpush.msra.mxu2 %v223_v6  ;;  %v125_v20 = vld [vmem:[%s1029_s0 + $0x18] sm:$0xff]  ;;  %v212_v23 = vld [vmem:[#allocation2 + $0x10] sm:$0xff]  ;;  %v211_v24 = vld [vmem:[#allocation2 + $0x8] sm:$0xff] }
  0x1d   :  { %v129_v21 = vld [vmem:[%s1029_s0 + $0x38] sm:$0xff]  ;;  %v210_v25 = vld [vmem:[#allocation2] sm:$0xff]  ;;  %v293_v31 = vld [vmem:[#allocation4 + $0x70] sm:$0xff] }
  0x1e   :  { %233 = vmatpush.msra.mxu1 %v222_v9  ;;  %591 = vmatpush.msra.mxu2 %v222_v9  ;;  %v213_v22 = vld [vmem:[#allocation2 + $0x18] sm:$0xff]  ;;  %v627_v26 = vld [vmem:[%s1031_s2] ss:$0 sm:$0xff]  ;;  %v292_v32 = vld [vmem:[#allocation4 + $0x68] sm:$0xff] }
  0x1f   :  { %v294_v30 = vld [vmem:[#allocation4 + $0x78] sm:$0xff]  ;;  %v291_v35 = vld [vmem:[#allocation4 + $0x60] sm:$0xff]  ;;  %v289_v41 = vld [vmem:[#allocation4 + $0x50] sm:$0xff] }
  0x20   :  { %234 = vmatpush.msra.mxu1 %v221_v10  ;;  %592 = vmatpush.msra.mxu2 %v221_v10  ;;  %v290_v39 = vld [vmem:[#allocation4 + $0x58] sm:$0xff]  ;;  %v288_v42 = vld [vmem:[#allocation4 + $0x48] sm:$0xff]  ;;  %v287_v45 = vld [vmem:[#allocation4 + $0x40] sm:$0xff] }
  0x21   :  { %579 = vmatmul.msk.f32.gmra.mxu0 %vm136_vm0, %v123_v7  ;;  %583 = vmatmul.msk.f32.gmra.mxu3 %vm136_vm0, %v127_v8  ;;  %v286_v49 = vld [vmem:[#allocation4 + $0x38] sm:$0xff]  ;;  %v285_v51 = vld [vmem:[#allocation4 + $0x30] sm:$0xff]  ;;  %v284_v52 = vld [vmem:[#allocation4 + $0x28] sm:$0xff] }
  0x22   :  { %235 = vmatpush.msra.mxu1 %v220_v11  ;;  %593 = vmatpush.msra.mxu2 %v220_v11  ;;  %v283_v55 = vld [vmem:[#allocation4 + $0x20] sm:$0xff]  ;;  %v282_v59 = vld [vmem:[#allocation4 + $0x18] sm:$0xff]  ;;  %v281_v61 = vld [vmem:[#allocation4 + $0x10] sm:$0xff] }
  0x23   :  { %v280_v1 = vld [vmem:[#allocation4 + $0x8] sm:$0xff]  ;;  %v279_v2 = vld [vmem:[#allocation4] sm:$0xff] }
  0x24   :  { %236 = vmatpush.msra.mxu1 %v219_v12  ;;  %594 = vmatpush.msra.mxu2 %v219_v12  ;;  %v628_v3 = vld [vmem:[%s1033_s4] ss:$0 sm:$0xff] }
  0x26   :  { %237 = vmatpush.msra.mxu1 %v218_v13  ;;  %595 = vmatpush.msra.mxu2 %v218_v13 }
  0x28   :  { %238 = vmatpush.msra.mxu1 %v217_v16  ;;  %596 = vmatpush.msra.mxu2 %v217_v16 }
  0x29   :  { %580 = vmatmul.msk.f32.gmra.mxu0 %vm136_vm0, %v124_v14  ;;  %584 = vmatmul.msk.f32.gmra.mxu3 %vm136_vm0, %v128_v15 }
  0x2a   :  { %239 = vmatpush.msra.mxu1 %v216_v17  ;;  %597 = vmatpush.msra.mxu2 %v216_v17 }
  0x2c   :  { %240 = vmatpush.msra.mxu1 %v215_v18  ;;  %598 = vmatpush.msra.mxu2 %v215_v18  ;;  %v371_v18 = vld [vmem:[#allocation6 + $0x78] sm:$0xff] }
  0x2d   :  { %376 = vmatpush.msrb.mxu3 %v371_v18  ;;  %v429_v18 = vld [vmem:[#allocation7 + $0x20] sm:$0xff] }
  0x2e   :  { %241 = vmatpush.msra.mxu1 %v214_v19  ;;  %599 = vmatpush.msra.mxu2 %v214_v19  ;;  %v370_v19 = vld [vmem:[#allocation6 + $0x70] sm:$0xff] }
  0x2f   :  { %377 = vmatpush.msrb.mxu3 %v370_v19  ;;  %v427_v19 = vld [vmem:[#allocation7 + $0x10] sm:$0xff] }
  0x30   :  { %242 = vmatpush.msra.mxu1 %v213_v22  ;;  %600 = vmatpush.msra.mxu2 %v213_v22 }
  0x31   :  { %581 = vmatmul.msk.f32.gmra.mxu0 %vm136_vm0, %v125_v20  ;;  %585 = vmatmul.msk.f32.gmra.mxu3 %vm136_vm0, %v129_v21  ;;  %v369_v21 = vld [vmem:[#allocation6 + $0x68] sm:$0xff] }
  0x32   :  { %243 = vmatpush.msra.mxu1 %v212_v23  ;;  %601 = vmatpush.msra.mxu2 %v212_v23  ;;  %v368_v23 = vld [vmem:[#allocation6 + $0x60] sm:$0xff] }
  0x33   :  { %378 = vmatpush.msrb.mxu3 %v369_v21 }
  0x34   :  { %244 = vmatpush.msra.mxu1 %v211_v24  ;;  %602 = vmatpush.msra.mxu2 %v211_v24  ;;  %v367_v24 = vld [vmem:[#allocation6 + $0x58] sm:$0xff] }
  0x35   :  { %379 = vmatpush.msrb.mxu3 %v368_v23  ;;  %v981_v23 = vld [vmem:[%s1037_s8] ss:$0 sm:$0xff] }
  0x36   :  { %245 = vmatpush.msra.mxu1 %v210_v25  ;;  %603 = vmatpush.msra.mxu2 %v210_v25 }
  0x37   :  { %380 = vmatpush.msrb.mxu3 %v367_v24 }
  0x38   :  { %295 = vmatpush.msrb.mxu2 %v294_v30 }
  0x3a   :  { %296 = vmatpush.msrb.mxu2 %v293_v31 }
  0x3c   :  { %297 = vmatpush.msrb.mxu2 %v292_v32  ;;  %v364_v32 = vld [vmem:[#allocation6 + $0x40] sm:$0xff] }
  0x3e   :  { %298 = vmatpush.msrb.mxu2 %v291_v35 }
  0x40   :  { %299 = vmatpush.msrb.mxu2 %v290_v39  ;;  %v361_v39 = vld [vmem:[#allocation6 + $0x28] sm:$0xff] }
  0x42   :  { %300 = vmatpush.msrb.mxu2 %v289_v41 }
  0x44   :  { %301 = vmatpush.msrb.mxu2 %v288_v42  ;;  %v360_v42 = vld [vmem:[#allocation6 + $0x20] sm:$0xff] }
  0x46   :  { %302 = vmatpush.msrb.mxu2 %v287_v45  ;;  %v359_v45 = vld [vmem:[#allocation6 + $0x18] sm:$0xff] }
  0x48   :  { %303 = vmatpush.msrb.mxu2 %v286_v49  ;;  %v358_v49 = vld [vmem:[#allocation6 + $0x10] sm:$0xff] }
  0x4a   :  { %304 = vmatpush.msrb.mxu2 %v285_v51 }
  0x4c   :  { %305 = vmatpush.msrb.mxu2 %v284_v52  ;;  %v357_v52 = vld [vmem:[#allocation6 + $0x8] sm:$0xff] }
  0x4e   :  { %306 = vmatpush.msrb.mxu2 %v283_v55  ;;  %v629_v55 = vld [vmem:[%s1035_s6] ss:$0 sm:$0xff] }
  0x50   :  { %307 = vmatpush.msrb.mxu2 %v282_v59 }
  0x52   :  { %308 = vmatpush.msrb.mxu2 %v281_v61 }
  0x54   :  { %309 = vmatpush.msrb.mxu2 %v280_v1 }
  0x56   :  { %310 = vmatpush.msrb.mxu2 %v279_v2 }
  0x96   :  { %v178_v27 = vpop.f32.mrf.mxu0 }
  0x97   :  { %v892_v28 = vadd.f32 %v627_v26, %v178_v27  ;;  %v365_v27 = vld [vmem:[#allocation6 + $0x48] sm:$0xff] }
  0x99   :  { %v202_v29 = vmax.f32 %v892_v28, 0.0 }
  0x9b   :  { %246 = vmatmul.f32.vlgmr.msra.gmra.mxu1 %v202_v29 }
  0x9c   :  { %v190_v33 = vpop.f32.mrf.mxu3 }
  0x9d   :  { %v897_v34 = vadd.f32 %v627_v26, %v190_v33  ;;  %v363_v33 = vld [vmem:[#allocation6 + $0x38] sm:$0xff] }
  0x9e   :  { %v181_v36 = vpop.f32.mrf.mxu0 }
  0x9f   :  { %v899_v37 = vadd.f32 %v627_v26, %v181_v36  ;;  %v206_v38 = vmax.f32 %v897_v34, 0.0  ;;  %v362_v36 = vld [vmem:[#allocation6 + $0x30] sm:$0xff] }
  0xa1   :  { %v203_v40 = vmax.f32 %v899_v37, 0.0  ;;  %258 = vmatmul.f32.vlgmr.msra.gmra.mxu2 %v206_v38  ;;  %v440_v37 = vld [vmem:[#allocation7 + $0x78] sm:$0xff] }
  0xa2   :  { %441 = vmatpush.msrb.mxu0 %v440_v37  ;;  %v506_v37 = vld [vmem:[#allocation9 + $0x20] sm:$0xff] }
  0xa3   :  { %249 = vmatmul.f32.gmra.mxu1 %v203_v40 }
  0xa4   :  { %v193_v43 = vpop.f32.mrf.mxu3 }
  0xa5   :  { %v907_v44 = vadd.f32 %v627_v26, %v193_v43 }
  0xa6   :  { %v184_v46 = vpop.f32.mrf.mxu0 }
  0xa7   :  { %v909_v47 = vadd.f32 %v627_v26, %v184_v46  ;;  %v207_v48 = vmax.f32 %v907_v44, 0.0 }
  0xa9   :  { %v204_v50 = vmax.f32 %v909_v47, 0.0  ;;  %261 = vmatmul.f32.gmra.mxu2 %v207_v48 }
  0xab   :  { %252 = vmatmul.f32.gmra.mxu1 %v204_v50 }
  0xac   :  { %v196_v53 = vpop.f32.mrf.mxu3 }
  0xad   :  { %v917_v54 = vadd.f32 %v627_v26, %v196_v53  ;;  %v356_v53 = vld [vmem:[#allocation6] sm:$0xff] }
  0xae   :  { %v187_v56 = vpop.f32.mrf.mxu0 }
  0xaf   :  { %v919_v57 = vadd.f32 %v627_v26, %v187_v56  ;;  %v208_v58 = vmax.f32 %v917_v54, 0.0  ;;  %v426_v54 = vld [vmem:[#allocation7 + $0x8] sm:$0xff] }
  0xb1   :  { %v205_v60 = vmax.f32 %v919_v57, 0.0  ;;  %264 = vmatmul.f32.gmra.mxu2 %v208_v58  ;;  %v435_v57 = vld [vmem:[#allocation7 + $0x50] sm:$0xff] }
  0xb3   :  { %255 = vmatmul.f32.gmra.mxu1 %v205_v60 }
  0xb4   :  { %v199_v62 = vpop.f32.mrf.mxu3 }
  0xb5   :  { %v927_v63 = vadd.f32 %v627_v26, %v199_v62  ;;  %v366_v26 = vld [vmem:[#allocation6 + $0x50] sm:$0xff] }
  0xb6   :  { %381 = vmatpush.msrb.mxu3 %v366_v26 }
  0xb7   :  { %v209_v0 = vmax.f32 %v927_v63, 0.0 }
  0xb8   :  { %382 = vmatpush.msrb.mxu3 %v365_v27 }
  0xb9   :  { %267 = vmatmul.f32.gmra.mxu2 %v209_v0 }
  0xba   :  { %383 = vmatpush.msrb.mxu3 %v364_v32 }
  0xbc   :  { %384 = vmatpush.msrb.mxu3 %v363_v33 }
  0xbe   :  { %385 = vmatpush.msrb.mxu3 %v362_v36 }
  0xc0   :  { %386 = vmatpush.msrb.mxu3 %v361_v39  ;;  %v517_v39 = vld [vmem:[#allocation9 + $0x78] sm:$0xff] }
  0xc1   :  { %604 = vmatpush.msrb.mxu1 %v517_v39 }
  0xc2   :  { %387 = vmatpush.msrb.mxu3 %v360_v42  ;;  %v515_v42 = vld [vmem:[#allocation9 + $0x68] sm:$0xff] }
  0xc4   :  { %388 = vmatpush.msrb.mxu3 %v359_v45 }
  0xc6   :  { %389 = vmatpush.msrb.mxu3 %v358_v49 }
  0xc8   :  { %390 = vmatpush.msrb.mxu3 %v357_v52  ;;  %v512_v52 = vld [vmem:[#allocation9 + $0x50] sm:$0xff] }
  0xca   :  { %391 = vmatpush.msrb.mxu3 %v356_v53  ;;  %v511_v53 = vld [vmem:[#allocation9 + $0x48] sm:$0xff] }
 0x118   :  { %v247_v4 = vpop.f32.mrf.mxu1 }
 0x119   :  { %v248_v5 = vadd.f32 %v628_v3, %v247_v4 }
 0x11b   :  { %v271_v6 = vmax.f32 %v248_v5, 0.0 }
 0x11d   :  { %311 = vmatmul.f32.vlgmr.msrb.gmra.mxu2 %v271_v6 }
 0x120   :  { %v250_v7 = vpop.f32.mrf.mxu1 }
 0x121   :  { %v251_v8 = vadd.f32 %v628_v3, %v250_v7  ;;  %v438_v7 = vld [vmem:[#allocation7 + $0x68] sm:$0xff] }
 0x123   :  { %v272_v9 = vmax.f32 %v251_v8, 0.0 }
 0x124   :  { %v259_v13 = vpop.f32.mrf.mxu2 }
 0x125   :  { %314 = vmatmul.f32.gmra.mxu2 %v272_v9  ;;  %v260_v17 = vadd.f32 %v628_v3, %v259_v13  ;;  %v433_v13 = vld [vmem:[#allocation7 + $0x40] sm:$0xff] }
 0x127   :  { %v275_v22 = vmax.f32 %v260_v17, 0.0 }
 0x128   :  { %v253_v10 = vpop.f32.mrf.mxu1 }
 0x129   :  { %v254_v11 = vadd.f32 %v628_v3, %v253_v10  ;;  %v436_v10 = vld [vmem:[#allocation7 + $0x58] sm:$0xff] }
 0x12b   :  { %v273_v12 = vmax.f32 %v254_v11, 0.0 }
 0x12c   :  { %v262_v20 = vpop.f32.mrf.mxu2 }
 0x12d   :  { %317 = vmatmul.f32.gmra.mxu2 %v273_v12  ;;  %v263_v25 = vadd.f32 %v628_v3, %v262_v20 }
 0x12f   :  { %v276_v31 = vmax.f32 %v263_v25, 0.0 }
 0x130   :  { %v256_v14 = vpop.f32.mrf.mxu1 }
 0x131   :  { %v257_v15 = vadd.f32 %v628_v3, %v256_v14  ;;  %v431_v14 = vld [vmem:[#allocation7 + $0x30] sm:$0xff] }
 0x133   :  { %v274_v16 = vmax.f32 %v257_v15, 0.0  ;;  %v430_v15 = vld [vmem:[#allocation7 + $0x28] sm:$0xff] }
 0x134   :  { %v265_v30 = vpop.f32.mrf.mxu2 }
 0x135   :  { %320 = vmatmul.f32.gmra.mxu2 %v274_v16  ;;  %v266_v35 = vadd.f32 %v628_v3, %v265_v30 }
 0x137   :  { %v277_v41 = vmax.f32 %v266_v35, 0.0 }
 0x13c   :  { %v268_v43 = vpop.f32.mrf.mxu2 }
 0x13d   :  { %323 = vmatmul.f32.gmra.mxu2 %v275_v22  ;;  %v269_v46 = vadd.f32 %v628_v3, %v268_v43 }
 0x13f   :  { %v278_v51 = vmax.f32 %v269_v46, 0.0  ;;  %v514_v46 = vld [vmem:[#allocation9 + $0x60] sm:$0xff] }
 0x145   :  { %326 = vmatmul.f32.gmra.mxu2 %v276_v31 }
 0x14d   :  { %329 = vmatmul.f32.gmra.mxu2 %v277_v41  ;;  %v516_v41 = vld [vmem:[#allocation9 + $0x70] sm:$0xff] }
 0x14e   :  { %605 = vmatpush.msrb.mxu1 %v516_v41 }
 0x150   :  { %606 = vmatpush.msrb.mxu1 %v515_v42 }
 0x152   :  { %607 = vmatpush.msrb.mxu1 %v514_v46 }
 0x155   :  { %332 = vmatmul.f32.gmra.mxu2 %v278_v51  ;;  %v513_v51 = vld [vmem:[#allocation9 + $0x58] sm:$0xff] }
 0x156   :  { %608 = vmatpush.msrb.mxu1 %v513_v51 }
 0x158   :  { %609 = vmatpush.msrb.mxu1 %v512_v52 }
 0x15a   :  { %610 = vmatpush.msrb.mxu1 %v511_v53 }
 0x1a0   :  { %v312_v56 = vpop.f32.mrf.mxu2 }
 0x1a1   :  { %v336_v59 = vadd.f32 %v312_v56, %v202_v29 }
 0x1a3   :  { %v940_v61 = vadd.f32 %v629_v55, %v336_v59  ;;  %v510_v59 = vld [vmem:[#allocation9 + $0x40] sm:$0xff] }
 0x1a4   :  { %611 = vmatpush.msrb.mxu1 %v510_v59 }
 0x1a5   :  { %392 = vmatmul.f32.vlgmr.msrb.gmra.mxu3 %v940_v61 }
 0x1a8   :  { %v315_v62 = vpop.f32.mrf.mxu2 }
 0x1a9   :  { %v337_v1 = vadd.f32 %v315_v62, %v203_v40  ;;  %v439_v40 = vld [vmem:[#allocation7 + $0x70] sm:$0xff] }
 0x1aa   :  { %442 = vmatpush.msrb.mxu0 %v439_v40 }
 0x1ab   :  { %v945_v2 = vadd.f32 %v629_v55, %v337_v1  ;;  %v509_v1 = vld [vmem:[#allocation9 + $0x38] sm:$0xff] }
 0x1ac   :  { %443 = vmatpush.msrb.mxu0 %v438_v7  ;;  %612 = vmatpush.msrb.mxu1 %v509_v1  ;;  %v505_v7 = vld [vmem:[#allocation9 + $0x18] sm:$0xff] }
 0x1ad   :  { %395 = vmatmul.f32.gmra.mxu3 %v945_v2 }
 0x1b0   :  { %v318_v3 = vpop.f32.mrf.mxu2 }
 0x1b1   :  { %v338_v4 = vadd.f32 %v318_v3, %v204_v50  ;;  %v437_v50 = vld [vmem:[#allocation7 + $0x60] sm:$0xff]  ;;  %v508_v3 = vld [vmem:[#allocation9 + $0x30] sm:$0xff] }
 0x1b2   :  { %444 = vmatpush.msrb.mxu0 %v437_v50  ;;  %613 = vmatpush.msrb.mxu1 %v508_v3 }
 0x1b3   :  { %v950_v5 = vadd.f32 %v629_v55, %v338_v4  ;;  %v507_v4 = vld [vmem:[#allocation9 + $0x28] sm:$0xff] }
 0x1b4   :  { %445 = vmatpush.msrb.mxu0 %v436_v10  ;;  %614 = vmatpush.msrb.mxu1 %v507_v4  ;;  %v504_v10 = vld [vmem:[#allocation9 + $0x10] sm:$0xff] }
 0x1b5   :  { %398 = vmatmul.f32.gmra.mxu3 %v950_v5 }
 0x1b6   :  { %446 = vmatpush.msrb.mxu0 %v435_v57  ;;  %615 = vmatpush.msrb.mxu1 %v506_v37  ;;  %v503_v57 = vld [vmem:[#allocation9 + $0x8] sm:$0xff] }
 0x1b8   :  { %v321_v28 = vpop.f32.mrf.mxu2  ;;  %616 = vmatpush.msrb.mxu1 %v505_v7 }
 0x1b9   :  { %v339_v29 = vadd.f32 %v321_v28, %v205_v60  ;;  %v434_v60 = vld [vmem:[#allocation7 + $0x48] sm:$0xff] }
 0x1ba   :  { %447 = vmatpush.msrb.mxu0 %v434_v60  ;;  %617 = vmatpush.msrb.mxu1 %v504_v10  ;;  %v502_v60 = vld [vmem:[#allocation9] sm:$0xff] }
 0x1bb   :  { %v955_v6 = vadd.f32 %v629_v55, %v339_v29 }
 0x1bc   :  { %448 = vmatpush.msrb.mxu0 %v433_v13  ;;  %618 = vmatpush.msrb.mxu1 %v503_v57 }
 0x1bd   :  { %401 = vmatmul.f32.gmra.mxu3 %v955_v6 }
 0x1be   :  { %619 = vmatpush.msrb.mxu1 %v502_v60 }
 0x1c0   :  { %v324_v8 = vpop.f32.mrf.mxu2 }
 0x1c1   :  { %v340_v47 = vadd.f32 %v324_v8, %v206_v38  ;;  %v432_v38 = vld [vmem:[#allocation7 + $0x38] sm:$0xff] }
 0x1c2   :  { %449 = vmatpush.msrb.mxu0 %v432_v38 }
 0x1c3   :  { %v960_v9 = vadd.f32 %v629_v55, %v340_v47 }
 0x1c4   :  { %450 = vmatpush.msrb.mxu0 %v431_v14 }
 0x1c5   :  { %404 = vmatmul.f32.gmra.mxu3 %v960_v9 }
 0x1c6   :  { %451 = vmatpush.msrb.mxu0 %v430_v15 }
 0x1c8   :  { %v327_v11 = vpop.f32.mrf.mxu2  ;;  %452 = vmatpush.msrb.mxu0 %v429_v18 }
 0x1c9   :  { %v341_v12 = vadd.f32 %v327_v11, %v207_v48  ;;  %v428_v48 = vld [vmem:[#allocation7 + $0x18] sm:$0xff]  ;;  %v631_v11 = vld [vmem:[%s1039_s10] ss:$0 sm:$0xff] }
 0x1ca   :  { %453 = vmatpush.msrb.mxu0 %v428_v48 }
 0x1cb   :  { %v965_v34 = vadd.f32 %v629_v55, %v341_v12 }
 0x1cc   :  { %454 = vmatpush.msrb.mxu0 %v427_v19 }
 0x1cd   :  { %407 = vmatmul.f32.gmra.mxu3 %v965_v34 }
 0x1ce   :  { %455 = vmatpush.msrb.mxu0 %v426_v54 }
 0x1d0   :  { %v330_v16 = vpop.f32.mrf.mxu2 }
 0x1d1   :  { %v342_v17 = vadd.f32 %v330_v16, %v208_v58  ;;  %v425_v58 = vld [vmem:[#allocation7] sm:$0xff] }
 0x1d2   :  { %456 = vmatpush.msrb.mxu0 %v425_v58 }
 0x1d3   :  { %v970_v44 = vadd.f32 %v629_v55, %v342_v17 }
 0x1d4   :  { %522 = vmatpush.msra.mxu0 %v517_v39 }
 0x1d5   :  { %410 = vmatmul.f32.gmra.mxu3 %v970_v44 }
 0x1d6   :  { %523 = vmatpush.msra.mxu0 %v516_v41 }
 0x1d8   :  { %v333_v20 = vpop.f32.mrf.mxu2  ;;  %524 = vmatpush.msra.mxu0 %v515_v42 }
 0x1d9   :  { %v343_v21 = vadd.f32 %v333_v20, %v209_v0 }
 0x1da   :  { %525 = vmatpush.msra.mxu0 %v514_v46 }
 0x1db   :  { %v975_v22 = vadd.f32 %v629_v55, %v343_v21 }
 0x1dc   :  { %526 = vmatpush.msra.mxu0 %v513_v51 }
 0x1dd   :  { %413 = vmatmul.f32.gmra.mxu3 %v975_v22 }
 0x1de   :  { %527 = vmatpush.msra.mxu0 %v512_v52 }
 0x1e0   :  { %528 = vmatpush.msra.mxu0 %v511_v53 }
 0x1e2   :  { %529 = vmatpush.msra.mxu0 %v510_v59 }
 0x1e4   :  { %530 = vmatpush.msra.mxu0 %v509_v1 }
 0x1e6   :  { %531 = vmatpush.msra.mxu0 %v508_v3 }
 0x1e8   :  { %532 = vmatpush.msra.mxu0 %v507_v4 }
 0x1ea   :  { %533 = vmatpush.msra.mxu0 %v506_v37 }
 0x1ec   :  { %534 = vmatpush.msra.mxu0 %v505_v7 }
 0x1ee   :  { %535 = vmatpush.msra.mxu0 %v504_v10 }
 0x1f0   :  { %536 = vmatpush.msra.mxu0 %v503_v57 }
 0x1f2   :  { %537 = vmatpush.msra.mxu0 %v502_v60 }
 0x228   :  { %v393_v24 = vpop.f32.mrf.mxu3 }
 0x229   :  { %v394_v25 = vadd.f32 %v981_v23, %v393_v24 }
 0x22b   :  { %v417_v26 = vmax.f32 %v394_v25, 0.0 }
 0x22d   :  { %457 = vmatmul.f32.vlgmr.msrb.gmra.mxu0 %v417_v26 }
 0x230   :  { %v396_v63 = vpop.f32.mrf.mxu3 }
 0x231   :  { %v397_v0 = vadd.f32 %v981_v23, %v396_v63 }
 0x233   :  { %v418_v27 = vmax.f32 %v397_v0, 0.0 }
 0x235   :  { %460 = vmatmul.f32.gmra.mxu0 %v418_v27 }
 0x238   :  { %v399_v30 = vpop.f32.mrf.mxu3 }
 0x239   :  { %v400_v31 = vadd.f32 %v981_v23, %v399_v30 }
 0x23b   :  { %v419_v32 = vmax.f32 %v400_v31, 0.0 }
 0x23d   :  { %463 = vmatmul.f32.gmra.mxu0 %v419_v32 }
 0x240   :  { %v402_v33 = vpop.f32.mrf.mxu3 }
 0x241   :  { %v403_v35 = vadd.f32 %v981_v23, %v402_v33 }
 0x243   :  { %v420_v36 = vmax.f32 %v403_v35, 0.0 }
 0x245   :  { %466 = vmatmul.f32.gmra.mxu0 %v420_v36 }
 0x248   :  { %v405_v43 = vpop.f32.mrf.mxu3 }
 0x249   :  { %v406_v45 = vadd.f32 %v981_v23, %v405_v43 }
 0x24b   :  { %v421_v49 = vmax.f32 %v406_v45, 0.0 }
 0x24d   :  { %469 = vmatmul.f32.gmra.mxu0 %v421_v49 }
 0x250   :  { %v408_v55 = vpop.f32.mrf.mxu3 }
 0x251   :  { %v409_v56 = vadd.f32 %v981_v23, %v408_v55 }
 0x253   :  { %v422_v62 = vmax.f32 %v409_v56, 0.0 }
 0x255   :  { %472 = vmatmul.f32.gmra.mxu0 %v422_v62 }
 0x258   :  { %v411_v28 = vpop.f32.mrf.mxu3 }
 0x259   :  { %v412_v29 = vadd.f32 %v981_v23, %v411_v28 }
 0x25b   :  { %v423_v40 = vmax.f32 %v412_v29, 0.0 }
 0x25d   :  { %475 = vmatmul.f32.gmra.mxu0 %v423_v40 }
 0x260   :  { %v414_v8 = vpop.f32.mrf.mxu3 }
 0x261   :  { %v415_v47 = vadd.f32 %v981_v23, %v414_v8 }
 0x263   :  { %v424_v50 = vmax.f32 %v415_v47, 0.0 }
 0x265   :  { %478 = vmatmul.f32.gmra.mxu0 %v424_v50 }
 0x2aa   :  { %v458_v12 = vpop.f32.mrf.mxu0 }
 0x2ab   :  { %v482_v13 = vadd.f32 %v458_v12, %v940_v61 }
 0x2ad   :  { %v494_v38 = vadd.f32 %v631_v11, %v482_v13 }
 0x2af   :  { %538 = vmatmul.f32.vlgmr.msra.gmra.mxu0 %v494_v38 }
 0x2b2   :  { %v461_v14 = vpop.f32.mrf.mxu0 }
 0x2b3   :  { %v483_v15 = vadd.f32 %v461_v14, %v945_v2 }
 0x2b5   :  { %v495_v16 = vadd.f32 %v631_v11, %v483_v15 }
 0x2b7   :  { %541 = vmatmul.f32.vlgmr.msrb.gmra.mxu1 %v495_v16 }
 0x2ba   :  { %v464_v17 = vpop.f32.mrf.mxu0 }
 0x2bb   :  { %v484_v18 = vadd.f32 %v464_v17, %v950_v5 }
 0x2bd   :  { %v496_v48 = vadd.f32 %v631_v11, %v484_v18 }
 0x2bf   :  { %544 = vmatmul.f32.gmra.mxu1 %v496_v48 }
 0x2c2   :  { %v467_v19 = vpop.f32.mrf.mxu0 }
 0x2c3   :  { %v485_v20 = vadd.f32 %v467_v19, %v955_v6 }
 0x2c5   :  { %v497_v21 = vadd.f32 %v631_v11, %v485_v20 }
 0x2c7   :  { %547 = vmatmul.f32.gmra.mxu1 %v497_v21 }
 0x2ca   :  { %v470_v54 = vpop.f32.mrf.mxu0 }
 0x2cb   :  { %v486_v61 = vadd.f32 %v470_v54, %v960_v9  ;;  %v632_v9 = vld [vmem:[%s1041_s12] ss:$0 sm:$0xff] }
 0x2cd   :  { %v498_v58 = vadd.f32 %v631_v11, %v486_v61 }
 0x2cf   :  { %550 = vmatmul.f32.gmra.mxu1 %v498_v58 }
 0x2d2   :  { %v473_v23 = vpop.f32.mrf.mxu0 }
 0x2d3   :  { %v487_v2 = vadd.f32 %v473_v23, %v965_v34 }
 0x2d5   :  { %v499_v24 = vadd.f32 %v631_v11, %v487_v2 }
 0x2d7   :  { %553 = vmatmul.f32.gmra.mxu1 %v499_v24 }
 0x2da   :  { %v476_v25 = vpop.f32.mrf.mxu0 }
 0x2db   :  { %v488_v5 = vadd.f32 %v476_v25, %v970_v44 }
 0x2dd   :  { %v500_v26 = vadd.f32 %v631_v11, %v488_v5 }
 0x2df   :  { %556 = vmatmul.f32.gmra.mxu1 %v500_v26 }
 0x2e2   :  { %v479_v63 = vpop.f32.mrf.mxu0 }
 0x2e3   :  { %v489_v6 = vadd.f32 %v479_v63, %v975_v22 }
 0x2e5   :  { %v501_v0 = vadd.f32 %v631_v11, %v489_v6 }
 0x2e7   :  { %559 = vmatmul.f32.gmra.mxu1 %v501_v0 }
 0x32c   :  { %v539_v27 = vpop.f32.mrf.mxu0 }
 0x32d   :  { %v540_v30 = vadd.f32 %v632_v9, %v539_v27 }
 0x32f   :  { %563 = vst [vmem:[%s1042_s13] sm:$0xff] %v540_v30 }
 0x334   :  { %v542_v34 = vpop.f32.mrf.mxu1 }
 0x335   :  { %v543_v31 = vadd.f32 %v632_v9, %v542_v34 }
 0x337   :  { %564 = vst [vmem:[%s1042_s13 + $0x8] sm:$0xff] %v543_v31 }
 0x33c   :  { %v545_v44 = vpop.f32.mrf.mxu1 }
 0x33d   :  { %v546_v22 = vadd.f32 %v632_v9, %v545_v44 }
 0x33f   :  { %565 = vst [vmem:[%s1042_s13 + $0x10] sm:$0xff] %v546_v22 }
 0x344   :  { %v548_v32 = vpop.f32.mrf.mxu1 }
 0x345   :  { %v549_v33 = vadd.f32 %v632_v9, %v548_v32 }
 0x347   :  { %566 = vst [vmem:[%s1042_s13 + $0x18] sm:$0xff] %v549_v33 }
 0x34c   :  { %v551_v35 = vpop.f32.mrf.mxu1 }
 0x34d   :  { %v552_v36 = vadd.f32 %v632_v9, %v551_v35 }
 0x34f   :  { %567 = vst [vmem:[%s1042_s13 + $0x20] sm:$0xff] %v552_v36 }
 0x354   :  { %v554_v39 = vpop.f32.mrf.mxu1 }
 0x355   :  { %v555_v41 = vadd.f32 %v632_v9, %v554_v39 }
 0x357   :  { %568 = vst [vmem:[%s1042_s13 + $0x28] sm:$0xff] %v555_v41 }
 0x35c   :  { %v557_v42 = vpop.f32.mrf.mxu1 }
 0x35d   :  { %v558_v43 = vadd.f32 %v632_v9, %v557_v42 }
 0x35f   :  { %569 = vst [vmem:[%s1042_s13 + $0x30] sm:$0xff] %v558_v43 }
 0x364   :  { %v560_v45 = vpop.f32.mrf.mxu1 }
 0x365   :  { %v561_v46 = vadd.f32 %v632_v9, %v560_v45 }
 0x367   :  { %570 = vst [vmem:[%s1042_s13 + $0x38] sm:$0xff] %v561_v46 }
 0x368   :  { %575 = vsyncpa [#allocation3], 1 }
 0x369   :  { %576 = vsyncpa [#allocation5], 1 }
 0x36a   :  { %577 = vsyncpa [#allocation8], 1 }

</bundles_post_ra>
